<compile_context>
chip_gen: v6e
topology: v6e:2x2x1
jax: 0.10.0
libtpu: 0.0.40
codegen_flags: <defaults>
</compile_context>

<pallas_src>
import jax
import jax.numpy as jnp
from jax.experimental import pallas as pl
from jax.experimental.pallas import tpu as pltpu


def _mlp_kernel(xT_ref, w1t_ref, b1_ref, w2t_ref, b2_ref, w3_ref, b3_ref, o_ref):
    # Everything is (features, TB): batch on the lane axis.
    xT = xT_ref[...]                                   # (2, TB)      f32
    w1t = w1t_ref[...]                                 # (L1, 2)

    # fc1: K=2 contraction -> two VPU broadcast FMAs (no MXU push/pop for ~no work).
    h1 = (w1t[:, 0:1] * xT[0:1, :]
          + w1t[:, 1:2] * xT[1:2, :]
          + b1_ref[...])                               # (L1, TB)
    h1 = jnp.maximum(h1, 0.0)

    # fc2: the only real matmul -> MXU, f32 accumulate.
    # TODO(synk): optional bf16 cast of (w2t, h1) here is a further MXU/HBM win on
    # v6e/v7x, omitted to keep exact f32 parity with the reference.
    h2 = jnp.dot(w2t_ref[...], h1,
                 preferred_element_type=jnp.float32) + b2_ref[...]   # (L2, TB)
    h2 = jnp.maximum(h2, 0.0)

    # fc3: N=1 output column -> VALU multiply + XLU sublane-reduce (lane-dense result).
    out = jnp.sum(w3_ref[...] * h2, axis=0, keepdims=True) + b3_ref[0]  # (1, TB)
    o_ref[...] = out.astype(o_ref.dtype)


def iron_grade_net_forward(x, params, *, batch_tile=None):
    """x: (B, 2) float32.  params: dict of W1,b1,W2,b2,W3,b3 (PyTorch shapes)."""
    B, in_dim = x.shape
    assert in_dim == 2
    W1, b1 = params["W1"], params["b1"]                # (2, L1), (1, L1)
    W2, b2 = params["W2"], params["b2"]                # (L1, L2), (1, L2)
    W3, b3 = params["W3"], params["b3"]                # (L2, 1), (1, 1)
    L1 = W1.shape[1]
    L2 = W2.shape[1]

    # Lane-dense batch tiles (multiple of 128); big batches get 512-wide tiles so
    # the per-step ~0.35us overhead amortizes and the grid has multiple steps.
    if batch_tile is None:
        tb = 512 if B >= 1024 else 128
    else:
        tb = batch_tile
        assert tb % 128 == 0, "batch_tile must be a multiple of 128 (lane width)"
    n_tiles = pl.cdiv(B, tb)
    Bp = n_tiles * tb

    # Layout plumbing (wrapper-side only): feature-major / batch-on-lanes arrays.
    xT = jnp.zeros((2, Bp), x.dtype).at[:, :B].set(x.T)    # (2, Bp), zero-padded tail
    w1t = W1.T                                             # (L1, 2)
    b1t = b1.reshape(L1, 1)                                # (L1, 1)
    w2t = W2.T                                             # (L2, L1)
    b2t = b2.reshape(L2, 1)                                # (L2, 1)
    w3c = W3.reshape(L2, 1)                                # (L2, 1)
    b3s = b3.reshape(1)                                    # (1,)  -> SMEM scalar

    full2d = lambda shape: pl.BlockSpec(shape, lambda i: (0, 0))

    outT = pl.pallas_call(
        _mlp_kernel,
        out_shape=jax.ShapeDtypeStruct((1, Bp), jnp.float32),
        grid_spec=pltpu.PrefetchScalarGridSpec(
            num_scalar_prefetch=0,
            grid=(n_tiles,),
            in_specs=[
                pl.BlockSpec((2, tb), lambda i: (0, i)),   # x tile (batch on lanes)
                full2d((L1, 2)),                           # W1^T (resident)
                full2d((L1, 1)),                           # b1
                full2d((L2, L1)),                          # W2^T (resident)
                full2d((L2, 1)),                           # b2
                full2d((L2, 1)),                           # W3 column
                pl.BlockSpec(memory_space=pltpu.MemorySpace.SMEM),  # b3 scalar
            ],
            out_specs=pl.BlockSpec((1, tb), lambda i: (0, i)),
        ),
        compiler_params=pltpu.CompilerParams(
            dimension_semantics=("parallel",),
        ),
    )(xT, w1t, b1t, w2t, b2t, w3c, b3s)

    return outT[:, :B].T                                   # (B, 1)


def init_params(key, layer_size1, layer_size2):
    """Deterministic init mirroring the PyTorch module's shapes.

    fc1: Linear(2, L1)   -> W1 (2, L1),  b1 (1, L1)
    fc2: Linear(L1, L2)  -> W2 (L1, L2), b2 (1, L2)
    fc3: Linear(L2, 1)   -> W3 (L2, 1),  b3 (1, 1)
    """
    k1, k2, k3, k4, k5, k6 = jax.random.split(key, 6)

    def uniform(k, shape, fan_in):
        bound = 1.0 / jnp.sqrt(jnp.float32(fan_in))
        return jax.random.uniform(k, shape, jnp.float32, -bound, bound)

    return {
        "W1": uniform(k1, (2, layer_size1), 2),
        "b1": uniform(k2, (1, layer_size1), 2),
        "W2": uniform(k3, (layer_size1, layer_size2), layer_size1),
        "b2": uniform(k4, (1, layer_size2), layer_size1),
        "W3": uniform(k5, (layer_size2, 1), layer_size2),
        "b3": uniform(k6, (1, 1), layer_size2),
    }


def _reference_forward(x, p):
    h1 = jnp.maximum(x @ p["W1"] + p["b1"], 0.0)
    h2 = jnp.maximum(h1 @ p["W2"] + p["b2"], 0.0)
    return h2 @ p["W3"] + p["b3"]


if __name__ == "__main__":
    key = jax.random.PRNGKey(0)
    k_params, k_x = jax.random.split(key)

    layer_size1, layer_size2 = 32, 32
    batch = 8

    params = init_params(k_params, layer_size1, layer_size2)
    x = jax.random.normal(k_x, (batch, 2), dtype=jnp.float32)

    out = jax.block_until_ready(iron_grade_net_forward(x, params))
    ref = _reference_forward(x, params)
    assert out.shape == (batch, 1)
    assert jnp.allclose(out, ref, atol=1e-5, rtol=1e-5)

    # Second check: non-multiple-of-128 batch -> padded tail + multi-step grid.
    x2 = jax.random.normal(jax.random.PRNGKey(1), (300, 2), dtype=jnp.float32)
    out2 = jax.block_until_ready(iron_grade_net_forward(x2, params))
    ref2 = _reference_forward(x2, params)
    assert out2.shape == (300, 1)
    assert jnp.allclose(out2, ref2, atol=1e-5, rtol=1e-5)

    print("KERNEL_OK")
</pallas_src>

<mosaic_0001>
module attributes {stable_mosaic.version = 11 : i64} {
  func.func @_mlp_kernel(%arg0: i32, %arg1: memref<2x128xf32, #tpu.memory_space<vmem>>, %arg2: memref<32x2xf32, #tpu.memory_space<vmem>>, %arg3: memref<32x1xf32, #tpu.memory_space<vmem>>, %arg4: memref<32x32xf32, #tpu.memory_space<vmem>>, %arg5: memref<32x1xf32, #tpu.memory_space<vmem>>, %arg6: memref<32x1xf32, #tpu.memory_space<vmem>>, %arg7: memref<1xf32, #tpu.memory_space<smem>>, %arg8: memref<1x128xf32, #tpu.memory_space<vmem>>) attributes {dimension_semantics = [#tpu.dimension_semantics<parallel>], iteration_bounds = array<i64: 1>, scalar_prefetch = 0 : i64, scratch_operands = 0 : i64, tpu.core_type = #tpu.core_type<tc>, window_params = [{transform_indices = @transform_0, window_bounds = array<i64: 2, 128>}, {pipeline_mode = #tpu.pipeline_mode<synchronous>, transform_indices = @transform_1, window_bounds = array<i64: 32, 2>}, {pipeline_mode = #tpu.pipeline_mode<synchronous>, transform_indices = @transform_2, window_bounds = array<i64: 32, 1>}, {pipeline_mode = #tpu.pipeline_mode<synchronous>, transform_indices = @transform_3, window_bounds = array<i64: 32, 32>}, {pipeline_mode = #tpu.pipeline_mode<synchronous>, transform_indices = @transform_4, window_bounds = array<i64: 32, 1>}, {pipeline_mode = #tpu.pipeline_mode<synchronous>, transform_indices = @transform_5, window_bounds = array<i64: 32, 1>}, {transform_indices = @transform_6, window_bounds = array<i64: 1>}, {transform_indices = @transform_7, window_bounds = array<i64: 1, 128>}]} {
    %c0 = arith.constant 0 : index
    %c0_0 = arith.constant 0 : index
    %0 = vector.load %arg1[%c0, %c0_0] : memref<2x128xf32, #tpu.memory_space<vmem>>, vector<2x128xf32>
    %c0_1 = arith.constant 0 : index
    %c0_2 = arith.constant 0 : index
    %1 = vector.load %arg2[%c0_1, %c0_2] : memref<32x2xf32, #tpu.memory_space<vmem>>, vector<32x2xf32>
    %2 = vector.extract_strided_slice %1 {offsets = [0, 0], sizes = [32, 1], strides = [1, 1]} : vector<32x2xf32> to vector<32x1xf32>
    %3 = vector.extract_strided_slice %0 {offsets = [0, 0], sizes = [1, 128], strides = [1, 1]} : vector<2x128xf32> to vector<1x128xf32>
    %4 = vector.broadcast %2 : vector<32x1xf32> to vector<32x128xf32>
    %5 = vector.broadcast %3 : vector<1x128xf32> to vector<32x128xf32>
    %6 = arith.mulf %4, %5 : vector<32x128xf32>
    %7 = vector.extract_strided_slice %1 {offsets = [0, 1], sizes = [32, 1], strides = [1, 1]} : vector<32x2xf32> to vector<32x1xf32>
    %8 = vector.extract_strided_slice %0 {offsets = [1, 0], sizes = [1, 128], strides = [1, 1]} : vector<2x128xf32> to vector<1x128xf32>
    %9 = vector.broadcast %7 : vector<32x1xf32> to vector<32x128xf32>
    %10 = vector.broadcast %8 : vector<1x128xf32> to vector<32x128xf32>
    %11 = arith.mulf %9, %10 : vector<32x128xf32>
    %12 = arith.addf %6, %11 : vector<32x128xf32>
    %c0_3 = arith.constant 0 : index
    %c0_4 = arith.constant 0 : index
    %13 = vector.load %arg3[%c0_3, %c0_4] : memref<32x1xf32, #tpu.memory_space<vmem>>, vector<32x1xf32>
    %14 = vector.broadcast %13 : vector<32x1xf32> to vector<32x128xf32>
    %15 = arith.addf %12, %14 : vector<32x128xf32>
    %cst = arith.constant 0.000000e+00 : f32
    %16 = vector.broadcast %cst : f32 to vector<32x128xf32>
    %17 = arith.maximumf %15, %16 : vector<32x128xf32>
    %c0_5 = arith.constant 0 : index
    %c0_6 = arith.constant 0 : index
    %18 = vector.load %arg4[%c0_5, %c0_6] : memref<32x32xf32, #tpu.memory_space<vmem>>, vector<32x32xf32>
    %cst_7 = arith.constant dense<0.000000e+00> : vector<32x128xf32>
    %19 = tpu.matmul %18, %17, %cst_7 {dimension_numbers = #tpu.dot_dimension_numbers<[1], [0], [0], [1], [0, 0, 1, 1], [], []>} : vector<32x32xf32>, vector<32x128xf32>, vector<32x128xf32> -> vector<32x128xf32>
    %c0_8 = arith.constant 0 : index
    %c0_9 = arith.constant 0 : index
    %20 = vector.load %arg5[%c0_8, %c0_9] : memref<32x1xf32, #tpu.memory_space<vmem>>, vector<32x1xf32>
    %21 = vector.broadcast %20 : vector<32x1xf32> to vector<32x128xf32>
    %22 = arith.addf %19, %21 : vector<32x128xf32>
    %cst_10 = arith.constant 0.000000e+00 : f32
    %23 = vector.broadcast %cst_10 : f32 to vector<32x128xf32>
    %24 = arith.maximumf %22, %23 : vector<32x128xf32>
    %c0_11 = arith.constant 0 : index
    %c0_12 = arith.constant 0 : index
    %25 = vector.load %arg6[%c0_11, %c0_12] : memref<32x1xf32, #tpu.memory_space<vmem>>, vector<32x1xf32>
    %26 = vector.broadcast %25 : vector<32x1xf32> to vector<32x128xf32>
    %27 = arith.mulf %26, %24 : vector<32x128xf32>
    %cst_13 = arith.constant dense<0.000000e+00> : vector<128xf32>
    %28 = vector.multi_reduction <add>, %27, %cst_13 [0] : vector<32x128xf32> to vector<128xf32>
    %29 = vector.shape_cast %28 : vector<128xf32> to vector<1x128xf32>
    %c0_14 = arith.constant 0 : index
    %30 = memref.load %arg7[%c0_14] : memref<1xf32, #tpu.memory_space<smem>>
    %31 = vector.broadcast %30 : f32 to vector<1x128xf32>
    %32 = arith.addf %29, %31 : vector<1x128xf32>
    %c0_15 = arith.constant 0 : index
    %c0_16 = arith.constant 0 : index
    %33 = vector.load %arg8[%c0_15, %c0_16] : memref<1x128xf32, #tpu.memory_space<vmem>>, vector<1x128xf32>
    tpu.vector_store %arg8[%c0_15, %c0_16], %32 {strides = array<i32>} : memref<1x128xf32, #tpu.memory_space<vmem>>, vector<1x128xf32>,
    return
  }
  func.func @transform_0(%arg0: i32) -> (i32, i32) {
    %c0_i32 = arith.constant 0 : i32
    %c0_i32_0 = arith.constant 0 : i32
    return %c0_i32, %arg0 : i32, i32
  }
  func.func @transform_1(%arg0: i32) -> (i32, i32) {
    %c0_i32 = arith.constant 0 : i32
    %c0_i32_0 = arith.constant 0 : i32
    %c0_i32_1 = arith.constant 0 : i32
    return %c0_i32, %c0_i32_0 : i32, i32
  }
  func.func @transform_2(%arg0: i32) -> (i32, i32) {
    %c0_i32 = arith.constant 0 : i32
    %c0_i32_0 = arith.constant 0 : i32
    %c0_i32_1 = arith.constant 0 : i32
    return %c0_i32, %c0_i32_0 : i32, i32
  }
  func.func @transform_3(%arg0: i32) -> (i32, i32) {
    %c0_i32 = arith.constant 0 : i32
    %c0_i32_0 = arith.constant 0 : i32
    %c0_i32_1 = arith.constant 0 : i32
    return %c0_i32, %c0_i32_0 : i32, i32
  }
  func.func @transform_4(%arg0: i32) -> (i32, i32) {
    %c0_i32 = arith.constant 0 : i32
    %c0_i32_0 = arith.constant 0 : i32
    %c0_i32_1 = arith.constant 0 : i32
    return %c0_i32, %c0_i32_0 : i32, i32
  }
  func.func @transform_5(%arg0: i32) -> (i32, i32) {
    %c0_i32 = arith.constant 0 : i32
    %c0_i32_0 = arith.constant 0 : i32
    %c0_i32_1 = arith.constant 0 : i32
    return %c0_i32, %c0_i32_0 : i32, i32
  }
  func.func @transform_6(%arg0: i32) -> i32 {
    %c0_i32 = arith.constant 0 : i32
    %c0_i32_0 = arith.constant 0 : i32
    return %c0_i32 : i32
  }
  func.func @transform_7(%arg0: i32) -> (i32, i32) {
    %c0_i32 = arith.constant 0 : i32
    %c0_i32_0 = arith.constant 0 : i32
    return %c0_i32, %arg0 : i32, i32
  }
}

</mosaic_0001>

<bundles_post_ra>
// kernel: tpu_custom_call.1
= control target key start
LH: loop header
LB: loop body
LE: loop exit
PB: predicated region body
PF: predicated region fallthrough
CT: control target
= control target key end

     0   :  { %v372_v2 = vmov 1   ;;  %v373_v3 = vmov 0   ;;  %s488_s0 = inlined_call_operand.vmem [shape: f32[2,128], index: 0, kind: input, shape index: {}]   ;;  %s489_s1 = inlined_call_operand.vmem [shape: f32[32,2], index: 1, kind: input, shape index: {}]   ;;  %s490_s2 = inlined_call_operand.vmem [shape: f32[32,1], index: 2, kind: input, shape index: {}]   ;;  %s491_s3 = inlined_call_operand.vmem [shape: f32[32,32], index: 3, kind: input, shape index: {}]   ;;  %s492_s4 = inlined_call_operand.vmem [shape: f32[32,1], index: 4, kind: input, shape index: {}]   ;;  %s493_s5 = inlined_call_operand.vmem [shape: f32[32,1], index: 5, kind: input, shape index: {}]   ;;  %s494_s6 = inlined_call_operand.<no memory space> [shape: f32[1], index: 6, kind: input, shape index: {}]   ;;  %s495_s7 = inlined_call_operand.hbm [shape: f32[1,128], index: 7, kind: output, shape index: {}]  }
   0x1   :  { %v32_v0 = vld [vmem:[%s489_s1 + $0x18] sm:$0xff]  ;;  %v31_v1 = vld [vmem:[%s489_s1 + $0x10] sm:$0xff]  ;;  %343 = vset.pattern.permute.xlu0 %v372_v2  ;;  %344 = vset.pattern.permute.xlu1 %v373_v3  ;;  %v30_v4 = vld [vmem:[%s489_s1 + $0x8] sm:$0xff] }
   0x2   :  { %74 = vperm.xlu0 %343, %v32_v0   ;;  %45 = vperm.xlu1 %344, %v31_v1  }
   0x3   :  { %13 = vsyncpa [#allocation4], 0  ;;  %v29_v5 = vld [vmem:[%s489_s1] sm:$0xff]  ;;  %v92_v6 = vld [vmem:[%s490_s2 + $0x18] sm:$0xff]  ;;  %vm149_vm0 = vcmask 261120   ;;  %v53_v20 = vlaneseq  ;;  %s374_s1 = smov [#allocation3]  }
   0x4   :  { %v90_v7 = vld [vmem:[%s490_s2 + $0x8] sm:$0xff]  ;;  %v125_v8 = vld [vmem:[%s492_s4] sm:$0xff]  ;;  %v91_v9 = vld [vmem:[%s490_s2 + $0x10] sm:$0xff]  ;;  %s298_s16 = sshll.u32 %s374_s1, 4  ;;  %s299_s16 = int_to_ptr.vmem [resolvable:$true] %s298_s16 }
   0x5   :  { %v127_v10 = vld [vmem:[%s492_s4 + $0x10] sm:$0xff]  ;;  %v89_v11 = vld [vmem:[%s490_s2] sm:$0xff]  ;;  %v126_v15 = vld [vmem:[%s492_s4 + $0x8] sm:$0xff]  ;;  %v54_v21 = vshrl.u32 %v53_v20, 7  ;;  %s350_s17 = scalar_lea.vmem %s299_s16, 16  ;;  %s354_s18 = scalar_lea.vmem %s299_s16, 32 }
   0x6   :  { %345 = vset.pattern.permute.xlu1 %v372_v2  ;;  %66 = vperm.xlu0 %343, %v30_v4   ;;  %v251_v12 = vld [vmem:[%s493_s5] sm:$0xff]  ;;  %v123_v14 = vld [vmem:[%s491_s3 + $0x10] sm:$0xff]  ;;  %v128_v17 = vld [vmem:[%s492_s4 + $0x18] sm:$0xff]  ;;  %p351_p0 = scmp.ne.s32.totalorder %s299_s16, %s350_s17  ;;  %p355_p1 = scmp.lt.s32.totalorder %s299_s16, %s299_s16 }
   0x7   :  { %70 = vperm.xlu1 %345, %v31_v1   ;;  %v121_v13 = vld [vmem:[%s491_s3] sm:$0xff]  ;;  %v253_v16 = vld [vmem:[%s493_s5 + $0x10] sm:$0xff]  ;;  %329 = vmatprep.mubr.msk.f32.mxu1 %vm149_vm0, %v123_v14  ;;  %v252_v18 = vld [vmem:[%s493_s5 + $0x8] sm:$0xff]  ;;  %v79_v24 = vsub.s32 1, %v54_v21  ;;  %v55_v25 = vsub.s32 0, %v54_v21  ;;  %p356_p2 = scmp.lt.s32.totalorder %s354_s18, %s350_s17 }
   0x8   :  { %326 = vmatprep.mubr.msk.f32.mxu0 %vm149_vm0, %v121_v13  ;;  %v254_v19 = vld [vmem:[%s493_s5 + $0x18] sm:$0xff]  ;;  %v28_v27 = vld [vmem:[%s488_s0] sm:$0x3]  ;;  %v122_v59 = vld [vmem:[%s491_s3 + $0x8] sm:$0xff] }
   0x9   :  { %v80_v29 = vrot.slane %v28_v27, %v79_v24  ;;  %v56_v30 = vrot.slane %v28_v27, %v55_v25  ;;  %v124_v60 = vld [vmem:[%s491_s3 + $0x18] sm:$0xff]  ;;  %p357_p3 = por %p356_p2, %p355_p1 }
   0xa   :  { %347 = vset.pattern.permute.xlu0 %v373_v3 }
   0xb   :  { %346 = vset.pattern.permute.xlu1 %v373_v3  ;;  %50 = vperm.xlu0 %347, %v32_v0   ;;  %p358_p4 = pnand %p357_p3, %p351_p0 }
   0xc   :  { %40 = vperm.xlu1 %346, %v30_v4  }
   0xf   :  { %35 = vperm.xlu0 %347, %v29_v5  }
  0x10   :  { %110 = vperm.xlu1 %346, %v92_v6  }
  0x13   :  { %100 = vperm.xlu0 %347, %v90_v7  }
  0x14   :  { %348 = vset.pattern.permute.xlu1 %v372_v2 }
  0x15   :  { %62 = vperm.xlu1 %348, %v29_v5  }
  0x17   :  { %131 = vperm.xlu0 %347, %v125_v8  }
  0x19   :  { %349 = vset.pattern.permute.xlu1 %v373_v3 }
  0x1a   :  { %105 = vperm.xlu1 %349, %v91_v9  }
  0x1b   :  { %141 = vperm.xlu0 %347, %v127_v10  }
  0x1e   :  { %95 = vperm.xlu1 %349, %v89_v11  }
  0x1f   :  { %257 = vperm.xlu0 %347, %v251_v12  }
  0x22   :  { %136 = vperm.xlu1 %349, %v126_v15  }
  0x23   :  { %267 = vperm.xlu0 %347, %v253_v16  }
  0x26   :  { %146 = vperm.xlu1 %349, %v128_v17  }
  0x2a   :  { %262 = vperm.xlu1 %349, %v252_v18  }
  0x2e   :  { %272 = vperm.xlu1 %349, %v254_v19  }
  0x7d   :  { %v46_v22 = vpop.permute.xlu1 %45  ;;  %v75_v23 = vpop.permute.xlu0 %74 }
  0x7e   :  { %v84_v31 = vmul.f32 %v80_v29, %v75_v23  ;;  %v59_v44 = vmul.f32 %v56_v30, %v46_v22 }
  0x81   :  { %v67_v26 = vpop.permute.xlu0 %66 }
  0x82   :  { %v71_v28 = vpop.permute.xlu1 %70  ;;  %v82_v41 = vmul.f32 %v80_v29, %v67_v26 }
  0x83   :  { %v83_v40 = vmul.f32 %v80_v29, %v71_v28 }
  0x85   :  { %v87_v49 = vadd.f32 %v83_v40, %v59_v44 }
  0x86   :  { %v51_v32 = vpop.permute.xlu0 %50 }
  0x87   :  { %v60_v33 = vmul.f32 %v56_v30, %v51_v32  ;;  %v41_v34 = vpop.permute.xlu1 %40 }
  0x88   :  { %v58_v42 = vmul.f32 %v56_v30, %v41_v34 }
  0x89   :  { %v88_v35 = vadd.f32 %v84_v31, %v60_v33 }
  0x8a   :  { %v36_v38 = vpop.permute.xlu0 %35  ;;  %v86_v47 = vadd.f32 %v82_v41, %v58_v42 }
  0x8b   :  { %v111_v36 = vpop.permute.xlu1 %110  ;;  %v57_v46 = vmul.f32 %v56_v30, %v36_v38 }
  0x8c   :  { %v116_v37 = vadd.f32 %v111_v36, %v88_v35 }
  0x8e   :  { %v120_v39 = vmax.f32 %v116_v37, 0.0  ;;  %v101_v45 = vpop.permute.xlu0 %100 }
  0x8f   :  { %v114_v51 = vadd.f32 %v101_v45, %v86_v47 }
  0x90   :  { %v63_v43 = vpop.permute.xlu1 %62  ;;  %318 = vmatprep.subr.mxu0 %v120_v39  ;;  %332 = vmatprep.subr.mxu1 %v120_v39 }
  0x91   :  { %319 = vmatpush3.msra.mxu0 %v120_v39  ;;  %336 = vmatpush3.msra.mxu1 %v120_v39  ;;  %v81_v48 = vmul.f32 %v80_v29, %v63_v43  ;;  %v118_v56 = vmax.f32 %v114_v51, 0.0  ;;  %v289_v29 = vstv %s494_s6 }
  0x92   :  { %v132_v61 = vpop.permute.xlu0 %131 }
  0x93   :  { %v85_v54 = vadd.f32 %v81_v48, %v57_v46 }
  0x95   :  { %v106_v50 = vpop.permute.xlu1 %105 }
  0x96   :  { %v115_v52 = vadd.f32 %v106_v50, %v87_v49  ;;  %v142_v63 = vpop.permute.xlu0 %141 }
  0x98   :  { %v119_v53 = vmax.f32 %v115_v52, 0.0 }
  0x99   :  { %v96_v55 = vpop.permute.xlu1 %95 }
  0x9a   :  { %v113_v57 = vadd.f32 %v96_v55, %v85_v54  ;;  %320 = vmatprep.subr.mxu0 %v119_v53  ;;  %333 = vmatprep.subr.mxu1 %v119_v53  ;;  %v258_v3 = vpop.permute.xlu0 %257 }
  0x9b   :  { %321 = vmatpush3.msra.mxu0 %v119_v53  ;;  %337 = vmatpush3.msra.mxu1 %v119_v53 }
  0x9c   :  { %v117_v58 = vmax.f32 %v113_v57, 0.0  ;;  %322 = vmatprep.subr.mxu0 %v118_v56  ;;  %334 = vmatprep.subr.mxu1 %v118_v56 }
  0x9d   :  { %323 = vmatpush3.msra.mxu0 %v118_v56  ;;  %338 = vmatpush3.msra.mxu1 %v118_v56  ;;  %v137_v62 = vpop.permute.xlu1 %136 }
  0x9e   :  { %324 = vmatprep.subr.mxu0 %v117_v58  ;;  %335 = vmatprep.subr.mxu1 %v117_v58  ;;  %v268_v17 = vpop.permute.xlu0 %267 }
  0x9f   :  { %325 = vmatpush3.msra.mxu0 %v117_v58  ;;  %339 = vmatpush3.msra.mxu1 %v117_v58 }
  0xa0   :  { %327 = vmatmul.mubr.msk.f32.vlgmr.msra.gmra.mxu0 %vm149_vm0, %v122_v59  ;;  %330 = vmatmul.mubr.msk.f32.vlgmr.msra.gmra.mxu1 %vm149_vm0, %v124_v60 }
  0xa1   :  { %v147_v0 = vpop.permute.xlu1 %146 }
  0xa5   :  { %v263_v11 = vpop.permute.xlu1 %262 }
  0xa9   :  { %v273_v20 = vpop.permute.xlu1 %272 }
 0x160   :  { %v328_v1 = vpop.f32.mrf.mxu0  ;;  %v331_v2 = vpop.f32.mrf.mxu1 }
 0x161   :  { %v234_v4 = vadd.f32 %v328_v1, %v137_v62  ;;  %v244_v8 = vadd.f32 %v331_v2, %v147_v0 }
 0x162   :  { %v228_v5 = vpop.f32.mrf.mxu0  ;;  %v238_v6 = vpop.f32.mrf.mxu1 }
 0x163   :  { %v248_v7 = vmax.f32 %v234_v4, 0.0  ;;  %v229_v9 = vadd.f32 %v228_v5, %v132_v61  ;;  %v239_v10 = vadd.f32 %v238_v6, %v142_v63  ;;  %v250_v15 = vmax.f32 %v244_v8, 0.0 }
 0x165   :  { %v247_v12 = vmax.f32 %v229_v9, 0.0  ;;  %v249_v13 = vmax.f32 %v239_v10, 0.0  ;;  %v276_v14 = vmul.f32 %v263_v11, %v248_v7  ;;  %v278_v21 = vmul.f32 %v273_v20, %v250_v15 }
 0x167   :  { %v275_v16 = vmul.f32 %v258_v3, %v247_v12  ;;  %v277_v19 = vmul.f32 %v268_v17, %v249_v13 }
 0x169   :  { %v279_v18 = vadd.f32 %v276_v14, %v275_v16 }
 0x16b   :  { %v280_v22 = vadd.f32 %v279_v18, %v277_v19 }
 0x16d   :  { %v281_v23 = vadd.f32 %v280_v22, %v278_v21 }
 0x16f   :  { %v282_v24 = vrot.slane %v281_v23, 4 }
 0x171   :  { %v283_v25 = vadd.f32 %v282_v24, %v281_v23 }
 0x173   :  { %v284_v26 = vrot.slane %v283_v25, 2 }
 0x175   :  { %v285_v27 = vadd.f32 %v284_v26, %v283_v25 }
 0x177   :  { %v286_v28 = vrot.slane %v285_v27, 1 }
 0x179   :  { %v287_v30 = vadd.f32 %v286_v28, %v285_v27 }
 0x17b   :  { %v290_v31 = vadd.f32 %v289_v29, %v287_v30 }
 0x17d   :  { %291 = vst [vmem:[#allocation3] sm:$0x1] %v290_v31 }
 0x17e   :  { %361 = shalt.err (!%p358_p4)
}
 0x17f   :  { %301 = dma.vmem_to_hbm [thread:$0]  %s299_s16, 16, %s495_s7, [#allocation4]  }
 0x180   :  { %370 = dma.done.wait [#allocation4], 16  }
 0x181   :  { %371 = vsyncadd [#allocation4], 4294967280 }
 0x182   :  { %305 = vsyncpa [#allocation4], 1 }

</bundles_post_ra>
